<compile_context>
chip_gen: v7x
topology: tpu7x:2x2x1
jax: 0.10.0
libtpu: 0.0.40
codegen_flags: <defaults>
</compile_context>

<pallas_src>
import functools

import jax
import jax.numpy as jnp
from jax import lax
from jax.experimental import pallas as pl
from jax.experimental.pallas import tpu as pltpu

_NEG_BIG = -1.0e30   # "minus infinity" for f32 logits (exp underflows to 0)


def _online_lse(m_sc, l_sc, s_a, s_b):
    """Online log-sum-exp update over two (block, block_k) f32 logit tiles."""
    m_cur = jnp.maximum(jnp.max(s_a, axis=-1, keepdims=True),
                        jnp.max(s_b, axis=-1, keepdims=True))
    m_new = jnp.maximum(m_sc[...], m_cur)
    alpha = jnp.exp(m_sc[...] - m_new)
    # (bf16 exp on v6e/v7x would ~2x the EUP-bound small-C regime; kept f32
    #  here for tight numerics per the review's "after validating tolerance".)
    l_sc[...] = (alpha * l_sc[...]
                 + jnp.sum(jnp.exp(s_a - m_new), axis=-1, keepdims=True)
                 + jnp.sum(jnp.exp(s_b - m_new), axis=-1, keepdims=True))
    m_sc[...] = m_new


def _core_step(qj, qi, kj, ki, loss_j_ref, loss_i_ref,
               mj_sc, lj_sc, mi_sc, li_sc, pos_sc, *, inv_temp):
    """One (row-tile, column-tile) grid step: 4 MXU matmuls + online LSE."""
    iq = pl.program_id(0)            # row tile    ("parallel")
    ik = pl.program_id(1)            # column tile ("arbitrary", innermost)
    nk = pl.num_programs(1)
    f32 = jnp.float32

    @pl.when(ik == 0)
    def _init():
        mj_sc[...] = jnp.full_like(mj_sc, _NEG_BIG)
        mi_sc[...] = jnp.full_like(mi_sc, _NEG_BIG)
        lj_sc[...] = jnp.zeros_like(lj_sc)
        li_sc[...] = jnp.zeros_like(li_sc)
        pos_sc[...] = jnp.zeros_like(pos_sc)

    tq, tk = qj.shape[0], kj.shape[0]
    on_diag = iq == ik
    eye = (lax.broadcasted_iota(jnp.int32, (tq, tk), 0)
           == lax.broadcasted_iota(jnp.int32, (tq, tk), 1))
    # Self-similarity mask folded into a single additive bias; it is all-zero
    # on off-diagonal tiles (scalar gate), so the off-diagonal steps pay only
    # one cheap broadcasted multiply + add instead of two full-tile selects.
    diag_bias = jnp.where(eye, f32(_NEG_BIG), f32(0.0)) * on_diag.astype(f32)

    dn = (((1,), (1,)), ((), ()))    # contract the feature axis
    it = f32(inv_temp)

    # ---- rows originating from zjs (phase 1: LSE before touching zis rows,
    #      so at most two (block, block) f32 logit tiles are live) ----
    s_jj = lax.dot_general(qj, kj, dn, preferred_element_type=f32) * it + diag_bias
    s_ji = lax.dot_general(qj, ki, dn, preferred_element_type=f32) * it

    # Positive-pair logit zjs[r]·zis[r]: diagonal of the cross block on the
    # diagonal tile step; the same value serves both halves.
    @pl.when(on_diag)
    def _positive():
        pos_sc[...] = jnp.sum(jnp.where(eye, s_ji, f32(0.0)),
                              axis=-1, keepdims=True)

    _online_lse(mj_sc, lj_sc, s_jj, s_ji)

    # ---- rows originating from zis (phase 2) ----
    s_ij = lax.dot_general(qi, kj, dn, preferred_element_type=f32) * it
    s_ii = lax.dot_general(qi, ki, dn, preferred_element_type=f32) * it + diag_bias
    _online_lse(mi_sc, li_sc, s_ij, s_ii)

    @pl.when(ik == nk - 1)
    def _finalize():
        # Cross-entropy with label 0 over [positive, negatives] ==
        # logsumexp(row without self-diagonal) - positive_logit.
        loss_j_ref[...] = mj_sc[...] + jnp.log(lj_sc[...]) - pos_sc[...]
        loss_i_ref[...] = mi_sc[...] + jnp.log(li_sc[...]) - pos_sc[...]


def _ntxent_kernel_resident(zj_ref, zi_ref, loss_j_ref, loss_i_ref,
                            mj_sc, lj_sc, mi_sc, li_sc, pos_sc,
                            *, block, inv_temp):
    # Both (N, C) operands are fully VMEM-resident (constant index_map):
    # row and column tiles are sliced straight out of VMEM — zero per-step DMA.
    ro = pl.multiple_of(pl.program_id(0) * block, block)
    co = pl.multiple_of(pl.program_id(1) * block, block)
    qj = zj_ref[pl.ds(ro, block), :]
    qi = zi_ref[pl.ds(ro, block), :]
    kj = zj_ref[pl.ds(co, block), :]
    ki = zi_ref[pl.ds(co, block), :]
    _core_step(qj, qi, kj, ki, loss_j_ref, loss_i_ref,
               mj_sc, lj_sc, mi_sc, li_sc, pos_sc, inv_temp=inv_temp)


def _ntxent_kernel_streamed(qj_ref, qi_ref, kj_ref, ki_ref,
                            loss_j_ref, loss_i_ref,
                            mj_sc, lj_sc, mi_sc, li_sc, pos_sc, *, inv_temp):
    # Large-operand path: (block, C) row tiles and column tiles are streamed
    # (double-buffered) from HBM by the BlockSpec pipeline.
    _core_step(qj_ref[...], qi_ref[...], kj_ref[...], ki_ref[...],
               loss_j_ref, loss_i_ref,
               mj_sc, lj_sc, mi_sc, li_sc, pos_sc, inv_temp=inv_temp)


def _prepare(z, use_cosine, op_dtype):
    """Hoisted prologue (runs ONCE in XLA, O(N*C)): f32 upcast, per-row L2
    normalization for the cosine path, optional cast to the MXU operand dtype.
    The 1/temperature scale is NOT folded in here — it is applied to the f32
    logits post-matmul inside the kernel."""
    z32 = z.astype(jnp.float32)
    if use_cosine:
        sq = jnp.sum(z32 * z32, axis=-1, keepdims=True)
        # 1/max(||x||, 1e-8) == rsqrt(max(||x||^2, 1e-16))
        z32 = z32 * lax.rsqrt(jnp.maximum(sq, jnp.float32(1e-16)))
    return z32.astype(op_dtype)


def _pick_block(n, c, itemsize, *, preferred_max=512, vmem_budget=24 << 20):
    """Largest row/column tile that (a) divides n, (b) is aligned to the
    operand dtype's sublane packing, (c) leaves >= 2 row tiles so the
    'parallel' row axis can shard across 2 TensorCores (v7x megacore), and
    (d) keeps the streamed-path working set (4 double-buffered input tiles
    + ~8 f32 (block, block) logit/exp temporaries) under the VMEM budget."""
    align = 8 if itemsize >= 4 else (16 if itemsize == 2 else 32)
    if n < 2 * align:
        return n
    cap = min(preferred_max, n // 2)
    cap -= cap % align
    if cap < align:
        return n
    cands = [t for t in range(align, cap + 1, align) if n % t == 0]
    if not cands:
        return n
    fits = [t for t in cands if 8 * t * c * itemsize + 32 * t * t <= vmem_budget]
    return max(fits) if fits else min(cands)


def ntxent_loss(zis, zjs, *, temperature=0.5, use_cosine_similarity=True,
                block=None, mxu_dtype=None, resident=None,
                resident_max_bytes=8 << 20):
    """NT-Xent loss; matches NTXentLoss(device, N, temperature, cos).forward().

    mxu_dtype: optional MXU operand dtype (e.g. jnp.bfloat16 for f32 inputs on
      v6e/v7x: 4-8x MXU rate and half the HBM bytes).  1/T is applied to the
      f32 logits post-matmul so it is never quantized into the operand.
    resident: force (True) / forbid (False) keeping both (N, C) operands fully
      VMEM-resident; None = automatic based on resident_max_bytes.
    """
    n, c = zis.shape
    assert zjs.shape == (n, c), (zis.shape, zjs.shape)

    op_dtype = jnp.dtype(mxu_dtype) if mxu_dtype is not None else jnp.dtype(zis.dtype)
    itemsize = op_dtype.itemsize

    # Hoisted normalization / operand cast (perf review items 1 & 7).
    zjs_n = _prepare(zjs, use_cosine_similarity, op_dtype)
    zis_n = _prepare(zis, use_cosine_similarity, op_dtype)

    if block is None:
        block = _pick_block(n, c, itemsize)
    assert n % block == 0 and (block == n or block % 8 == 0), (n, block)
    # Row axis = "parallel" (megacore / 2-TC sharding); column axis = the
    # sequential "arbitrary" reduction axis and MUST stay last (pos_sc is
    # written at iq == ik and read at ik == nk - 1 for the same row tile).
    grid = (n // block, n // block)

    if resident is None:
        resident = (2 * n * c * itemsize) <= resident_max_bytes

    inv_temp = 1.0 / float(temperature)
    o_spec = pl.BlockSpec((block, 1), lambda iq, ik: (iq, 0))
    scratch = [pltpu.VMEM((block, 1), jnp.float32) for _ in range(5)]

    if resident:
        kernel = functools.partial(_ntxent_kernel_resident,
                                   block=block, inv_temp=inv_temp)
        full_spec = pl.BlockSpec((n, c), lambda iq, ik: (0, 0))  # constant index
        in_specs = [full_spec, full_spec]
        operands = (zjs_n, zis_n)
        in_bytes = 4 * n * c * itemsize                 # x2 buffers, worst case
        hbm_bytes = 2 * n * c * itemsize                # each operand read once
    else:
        kernel = functools.partial(_ntxent_kernel_streamed, inv_temp=inv_temp)
        q_spec = pl.BlockSpec((block, c), lambda iq, ik: (iq, 0))
        k_spec = pl.BlockSpec((block, c), lambda iq, ik: (ik, 0))
        in_specs = [q_spec, q_spec, k_spec, k_spec]
        operands = (zjs_n, zis_n, zjs_n, zis_n)
        in_bytes = 8 * block * c * itemsize             # 4 tiles x 2 buffers
        hbm_bytes = 2 * n * c * itemsize * (1 + grid[1])

    # Raise the scoped-VMEM limit past the v5e 16 MiB / v6e-v7x 32 MiB defaults
    # when needed, but stay well inside v7x's 64 MiB physical VMEM.
    est = in_bytes + 32 * block * block + (1 << 20)
    vmem_limit = int(min(max(2 * est, 32 << 20), 48 << 20))

    cost = pl.CostEstimate(
        flops=int(8 * n * n * c),            # four (N,C)x(C,N) matmuls
        transcendentals=int(4 * n * n),      # ~one exp per logit
        bytes_accessed=int(hbm_bytes + 8 * n),
    )

    loss_j, loss_i = pl.pallas_call(
        kernel,
        out_shape=(
            jax.ShapeDtypeStruct((n, 1), jnp.float32),
            jax.ShapeDtypeStruct((n, 1), jnp.float32),
        ),
        grid_spec=pltpu.PrefetchScalarGridSpec(
            num_scalar_prefetch=0,
            grid=grid,
            in_specs=in_specs,
            out_specs=(o_spec, o_spec),
            scratch_shapes=scratch,
        ),
        compiler_params=pltpu.CompilerParams(
            dimension_semantics=("parallel", "arbitrary"),
            vmem_limit_bytes=vmem_limit,
        ),
        cost_estimate=cost,
    )(*operands)

    # Tiny final reduction (2N values) done in XLA, as in the module: sum / 2N.
    return (jnp.sum(loss_j) + jnp.sum(loss_i)) / jnp.float32(2 * n)


def _ntxent_ref(zis, zjs, temperature, use_cosine):
    """Pure-JAX reference mirroring the PyTorch forward literally."""
    n = zis.shape[0]
    n2 = 2 * n
    reps = jnp.concatenate([zjs, zis], axis=0).astype(jnp.float32)
    sim = jnp.matmul(reps, reps.T, precision=jax.lax.Precision.HIGHEST)
    if use_cosine:
        norm = jnp.linalg.norm(reps, axis=-1, keepdims=True)
        sim = sim / jnp.maximum(norm * norm.T, 1e-8)
    l_pos = jnp.diagonal(sim, offset=n)
    r_pos = jnp.diagonal(sim, offset=-n)
    positives = jnp.concatenate([l_pos, r_pos]).reshape(n2, 1)
    mask = ~(
        jnp.eye(n2, dtype=bool)
        | jnp.eye(n2, k=n, dtype=bool)
        | jnp.eye(n2, k=-n, dtype=bool)
    )
    negatives = sim[mask].reshape(n2, n2 - 2)
    logits = jnp.concatenate([positives, negatives], axis=1) / temperature
    logp = jax.nn.log_softmax(logits, axis=-1)
    loss = -jnp.sum(logp[:, 0])
    return loss / n2


if __name__ == "__main__":
    key = jax.random.PRNGKey(0)
    ks = jax.random.split(key, 6)

    # 1) Small shape matching the module's use (projection-head outputs):
    #    batch N=4, C=32, cosine, T=0.5 — single tile, VMEM-resident operands.
    zis = jax.random.normal(ks[0], (4, 32), dtype=jnp.float32)
    zjs = jax.random.normal(ks[1], (4, 32), dtype=jnp.float32)
    loss = ntxent_loss(zis, zjs, temperature=0.5, use_cosine_similarity=True)
    jax.block_until_ready(loss)
    ref = _ntxent_ref(zis, zjs, 0.5, True)
    assert jnp.allclose(loss, ref, rtol=1e-4, atol=1e-4), (float(loss), float(ref))

    # 2) Multi-tile grid (block=8 -> 2x2): online LSE across column steps,
    #    diagonal masking / positive extraction; VMEM-resident path.
    zis2 = jax.random.normal(ks[2], (16, 128), dtype=jnp.float32)
    zjs2 = jax.random.normal(ks[3], (16, 128), dtype=jnp.float32)
    loss2 = ntxent_loss(zis2, zjs2, temperature=0.2,
                        use_cosine_similarity=True, block=8)
    jax.block_until_ready(loss2)
    ref2 = _ntxent_ref(zis2, zjs2, 0.2, True)
    assert jnp.allclose(loss2, ref2, rtol=5e-4, atol=5e-4), (float(loss2), float(ref2))

    # 3) Dot-product similarity path (use_cosine_similarity=False).
    loss3 = ntxent_loss(zis2, zjs2, temperature=1.0,
                        use_cosine_similarity=False, block=8)
    jax.block_until_ready(loss3)
    ref3 = _ntxent_ref(zis2, zjs2, 1.0, False)
    assert jnp.allclose(loss3, ref3, rtol=5e-4, atol=5e-4), (float(loss3), float(ref3))

    # 4) Streamed-K path (forced): exercises the tiled HBM->VMEM pipeline that
    #    is used when the operands are too large to stay VMEM-resident.
    loss4 = ntxent_loss(zis2, zjs2, temperature=0.2,
                        use_cosine_similarity=True, block=8, resident=False)
    jax.block_until_ready(loss4)
    assert jnp.allclose(loss4, ref2, rtol=5e-4, atol=5e-4), (float(loss4), float(ref2))

    # 5) bf16 inputs: MXU operands stay bf16, accumulation in f32 (loose check).
    zis5 = jax.random.normal(ks[4], (8, 128), dtype=jnp.bfloat16)
    zjs5 = jax.random.normal(ks[5], (8, 128), dtype=jnp.bfloat16)
    loss5 = ntxent_loss(zis5, zjs5, temperature=0.5, use_cosine_similarity=True)
    jax.block_until_ready(loss5)
    ref5 = _ntxent_ref(zis5.astype(jnp.float32), zjs5.astype(jnp.float32), 0.5, True)
    assert jnp.allclose(loss5, ref5, rtol=0.1, atol=0.1), (float(loss5), float(ref5))

    # 6) f32 inputs with bf16 MXU operands (perf-review option): normalization
    #    stays f32, 1/T applied post-matmul in f32, so tolerance stays modest.
    loss6 = ntxent_loss(zis2, zjs2, temperature=0.2,
                        use_cosine_similarity=True, mxu_dtype=jnp.bfloat16)
    jax.block_until_ready(loss6)
    assert jnp.allclose(loss6, ref2, rtol=5e-2, atol=5e-2), (float(loss6), float(ref2))

    print("KERNEL_OK")
</pallas_src>

<mosaic_0001>
module attributes {stable_mosaic.version = 11 : i64} {
  func.func @_ntxent_kernel_resident(%arg0: i32, %arg1: i32, %arg2: memref<4x32xf32, #tpu.memory_space<vmem>>, %arg3: memref<4x32xf32, #tpu.memory_space<vmem>>, %arg4: memref<4x1xf32, #tpu.memory_space<vmem>>, %arg5: memref<4x1xf32, #tpu.memory_space<vmem>>, %arg6: memref<4x1xf32, #tpu.memory_space<vmem>>, %arg7: memref<4x1xf32, #tpu.memory_space<vmem>>, %arg8: memref<4x1xf32, #tpu.memory_space<vmem>>, %arg9: memref<4x1xf32, #tpu.memory_space<vmem>>, %arg10: memref<4x1xf32, #tpu.memory_space<vmem>>) attributes {dimension_semantics = [#tpu.dimension_semantics<parallel>, #tpu.dimension_semantics<arbitrary>], iteration_bounds = array<i64: 1, 1>, scalar_prefetch = 0 : i64, scratch_operands = 5 : i64, tpu.core_type = #tpu.core_type<tc>, window_params = [{pipeline_mode = #tpu.pipeline_mode<synchronous>, transform_indices = @transform_0, window_bounds = array<i64: 4, 32>}, {pipeline_mode = #tpu.pipeline_mode<synchronous>, transform_indices = @transform_1, window_bounds = array<i64: 4, 32>}, {transform_indices = @transform_2, window_bounds = array<i64: 4, 1>}, {transform_indices = @transform_3, window_bounds = array<i64: 4, 1>}]} {
    %c4_i32 = arith.constant 4 : i32
    %0 = arith.muli %arg0, %c4_i32 : i32
    %1 = tpu.assume_multiple %0, 4 : i32
    %c4_i32_0 = arith.constant 4 : i32
    %2 = arith.muli %arg1, %c4_i32_0 : i32
    %3 = tpu.assume_multiple %2, 4 : i32
    %4 = arith.index_cast %1 : i32 to index
    %c0 = arith.constant 0 : index
    %5 = vector.load %arg2[%4, %c0] : memref<4x32xf32, #tpu.memory_space<vmem>>, vector<4x32xf32>
    %6 = arith.index_cast %1 : i32 to index
    %c0_1 = arith.constant 0 : index
    %7 = vector.load %arg3[%6, %c0_1] : memref<4x32xf32, #tpu.memory_space<vmem>>, vector<4x32xf32>
    %8 = arith.index_cast %3 : i32 to index
    %c0_2 = arith.constant 0 : index
    %9 = vector.load %arg2[%8, %c0_2] : memref<4x32xf32, #tpu.memory_space<vmem>>, vector<4x32xf32>
    %10 = arith.index_cast %3 : i32 to index
    %c0_3 = arith.constant 0 : index
    %11 = vector.load %arg3[%10, %c0_3] : memref<4x32xf32, #tpu.memory_space<vmem>>, vector<4x32xf32>
    %c0_i32 = arith.constant 0 : i32
    %12 = arith.cmpi eq, %arg1, %c0_i32 : i32
    %13 = arith.extui %12 : i1 to i32
    %c0_i32_4 = arith.constant 0 : i32
    %14 = arith.cmpi ne, %13, %c0_i32_4 : i32
    scf.if %14 {
      %cst_45 = arith.constant -1.000000e+30 : f32
      %97 = vector.broadcast %cst_45 : f32 to vector<4x1xf32>
      %c0_46 = arith.constant 0 : index
      %c0_47 = arith.constant 0 : index
      %98 = vector.load %arg6[%c0_46, %c0_47] : memref<4x1xf32, #tpu.memory_space<vmem>>, vector<4x1xf32>
      tpu.vector_store %arg6[%c0_46, %c0_47], %97 {strides = array<i32>} : memref<4x1xf32, #tpu.memory_space<vmem>>, vector<4x1xf32>,
      %cst_48 = arith.constant -1.000000e+30 : f32
      %99 = vector.broadcast %cst_48 : f32 to vector<4x1xf32>
      %c0_49 = arith.constant 0 : index
      %c0_50 = arith.constant 0 : index
      %100 = vector.load %arg8[%c0_49, %c0_50] : memref<4x1xf32, #tpu.memory_space<vmem>>, vector<4x1xf32>
      tpu.vector_store %arg8[%c0_49, %c0_50], %99 {strides = array<i32>} : memref<4x1xf32, #tpu.memory_space<vmem>>, vector<4x1xf32>,
      %cst_51 = arith.constant 0.000000e+00 : f32
      %101 = vector.broadcast %cst_51 : f32 to vector<4x1xf32>
      %c0_52 = arith.constant 0 : index
      %c0_53 = arith.constant 0 : index
      %102 = vector.load %arg7[%c0_52, %c0_53] : memref<4x1xf32, #tpu.memory_space<vmem>>, vector<4x1xf32>
      tpu.vector_store %arg7[%c0_52, %c0_53], %101 {strides = array<i32>} : memref<4x1xf32, #tpu.memory_space<vmem>>, vector<4x1xf32>,
      %cst_54 = arith.constant 0.000000e+00 : f32
      %103 = vector.broadcast %cst_54 : f32 to vector<4x1xf32>
      %c0_55 = arith.constant 0 : index
      %c0_56 = arith.constant 0 : index
      %104 = vector.load %arg9[%c0_55, %c0_56] : memref<4x1xf32, #tpu.memory_space<vmem>>, vector<4x1xf32>
      tpu.vector_store %arg9[%c0_55, %c0_56], %103 {strides = array<i32>} : memref<4x1xf32, #tpu.memory_space<vmem>>, vector<4x1xf32>,
      %cst_57 = arith.constant 0.000000e+00 : f32
      %105 = vector.broadcast %cst_57 : f32 to vector<4x1xf32>
      %c0_58 = arith.constant 0 : index
      %c0_59 = arith.constant 0 : index
      %106 = vector.load %arg10[%c0_58, %c0_59] : memref<4x1xf32, #tpu.memory_space<vmem>>, vector<4x1xf32>
      tpu.vector_store %arg10[%c0_58, %c0_59], %105 {strides = array<i32>} : memref<4x1xf32, #tpu.memory_space<vmem>>, vector<4x1xf32>,
    } else {
    }
    %15 = arith.cmpi eq, %arg0, %arg1 : i32
    %16 = tpu.iota {dimensions = array<i32: 0>} : vector<4x4xi32>
    %17 = tpu.iota {dimensions = array<i32: 1>} : vector<4x4xi32>
    %18 = arith.cmpi eq, %16, %17 : vector<4x4xi32>
    %cst = arith.constant -1.000000e+30 : f32
    %cst_5 = arith.constant 0.000000e+00 : f32
    %19 = vector.broadcast %cst : f32 to vector<4x4xf32>
    %20 = vector.broadcast %cst_5 : f32 to vector<4x4xf32>
    %21 = arith.select %18, %19, %20 : vector<4x4xi1>, vector<4x4xf32>
    %22 = arith.extui %15 : i1 to i32
    %23 = arith.sitofp %22 : i32 to f32
    %24 = vector.broadcast %23 : f32 to vector<4x4xf32>
    %25 = arith.mulf %21, %24 : vector<4x4xf32>
    %cst_6 = arith.constant dense<0.000000e+00> : vector<4x4xf32>
    %26 = tpu.matmul %5, %9, %cst_6 {dimension_numbers = #tpu.dot_dimension_numbers<[1], [1], [0], [0], [0, 0, 1, 0], [], []>} : vector<4x32xf32>, vector<4x32xf32>, vector<4x4xf32> -> vector<4x4xf32>
    %cst_7 = arith.constant 2.000000e+00 : f32
    %27 = vector.broadcast %cst_7 : f32 to vector<4x4xf32>
    %28 = arith.mulf %26, %27 : vector<4x4xf32>
    %29 = arith.addf %28, %25 : vector<4x4xf32>
    %cst_8 = arith.constant dense<0.000000e+00> : vector<4x4xf32>
    %30 = tpu.matmul %5, %11, %cst_8 {dimension_numbers = #tpu.dot_dimension_numbers<[1], [1], [0], [0], [0, 0, 1, 0], [], []>} : vector<4x32xf32>, vector<4x32xf32>, vector<4x4xf32> -> vector<4x4xf32>
    %cst_9 = arith.constant 2.000000e+00 : f32
    %31 = vector.broadcast %cst_9 : f32 to vector<4x4xf32>
    %32 = arith.mulf %30, %31 : vector<4x4xf32>
    %33 = arith.extui %15 : i1 to i32
    %c0_i32_10 = arith.constant 0 : i32
    %34 = arith.cmpi ne, %33, %c0_i32_10 : i32
    scf.if %34 {
      %cst_45 = arith.constant 0.000000e+00 : f32
      %97 = vector.broadcast %cst_45 : f32 to vector<4x4xf32>
      %98 = arith.select %18, %32, %97 : vector<4x4xi1>, vector<4x4xf32>
      %cst_46 = arith.constant dense<0.000000e+00> : vector<4xf32>
      %99 = vector.multi_reduction <add>, %98, %cst_46 [1] : vector<4x4xf32> to vector<4xf32>
      %100 = vector.shape_cast %99 : vector<4xf32> to vector<4x1xf32>
      %c0_47 = arith.constant 0 : index
      %c0_48 = arith.constant 0 : index
      %101 = vector.load %arg10[%c0_47, %c0_48] : memref<4x1xf32, #tpu.memory_space<vmem>>, vector<4x1xf32>
      tpu.vector_store %arg10[%c0_47, %c0_48], %100 {strides = array<i32>} : memref<4x1xf32, #tpu.memory_space<vmem>>, vector<4x1xf32>,
    } else {
    }
    %cst_11 = arith.constant dense<0xFF800000> : vector<4xf32>
    %35 = vector.multi_reduction <maximumf>, %29, %cst_11 [1] : vector<4x4xf32> to vector<4xf32>
    %36 = vector.shape_cast %35 : vector<4xf32> to vector<4x1xf32>
    %cst_12 = arith.constant dense<0xFF800000> : vector<4xf32>
    %37 = vector.multi_reduction <maximumf>, %32, %cst_12 [1] : vector<4x4xf32> to vector<4xf32>
    %38 = vector.shape_cast %37 : vector<4xf32> to vector<4x1xf32>
    %39 = arith.maximumf %36, %38 : vector<4x1xf32>
    %c0_13 = arith.constant 0 : index
    %c0_14 = arith.constant 0 : index
    %40 = vector.load %arg6[%c0_13, %c0_14] : memref<4x1xf32, #tpu.memory_space<vmem>>, vector<4x1xf32>
    %41 = arith.maximumf %40, %39 : vector<4x1xf32>
    %c0_15 = arith.constant 0 : index
    %c0_16 = arith.constant 0 : index
    %42 = vector.load %arg6[%c0_15, %c0_16] : memref<4x1xf32, #tpu.memory_space<vmem>>, vector<4x1xf32>
    %43 = arith.subf %42, %41 : vector<4x1xf32>
    %44 = math.exp %43 : vector<4x1xf32>
    %c0_17 = arith.constant 0 : index
    %c0_18 = arith.constant 0 : index
    %45 = vector.load %arg7[%c0_17, %c0_18] : memref<4x1xf32, #tpu.memory_space<vmem>>, vector<4x1xf32>
    %46 = arith.mulf %44, %45 : vector<4x1xf32>
    %47 = vector.broadcast %41 : vector<4x1xf32> to vector<4x4xf32>
    %48 = arith.subf %29, %47 : vector<4x4xf32>
    %49 = math.exp %48 : vector<4x4xf32>
    %cst_19 = arith.constant dense<0.000000e+00> : vector<4xf32>
    %50 = vector.multi_reduction <add>, %49, %cst_19 [1] : vector<4x4xf32> to vector<4xf32>
    %51 = vector.shape_cast %50 : vector<4xf32> to vector<4x1xf32>
    %52 = arith.addf %46, %51 : vector<4x1xf32>
    %53 = vector.broadcast %41 : vector<4x1xf32> to vector<4x4xf32>
    %54 = arith.subf %32, %53 : vector<4x4xf32>
    %55 = math.exp %54 : vector<4x4xf32>
    %cst_20 = arith.constant dense<0.000000e+00> : vector<4xf32>
    %56 = vector.multi_reduction <add>, %55, %cst_20 [1] : vector<4x4xf32> to vector<4xf32>
    %57 = vector.shape_cast %56 : vector<4xf32> to vector<4x1xf32>
    %58 = arith.addf %52, %57 : vector<4x1xf32>
    %c0_21 = arith.constant 0 : index
    %c0_22 = arith.constant 0 : index
    %59 = vector.load %arg7[%c0_21, %c0_22] : memref<4x1xf32, #tpu.memory_space<vmem>>, vector<4x1xf32>
    tpu.vector_store %arg7[%c0_21, %c0_22], %58 {strides = array<i32>} : memref<4x1xf32, #tpu.memory_space<vmem>>, vector<4x1xf32>,
    %c0_23 = arith.constant 0 : index
    %c0_24 = arith.constant 0 : index
    %60 = vector.load %arg6[%c0_23, %c0_24] : memref<4x1xf32, #tpu.memory_space<vmem>>, vector<4x1xf32>
    tpu.vector_store %arg6[%c0_23, %c0_24], %41 {strides = array<i32>} : memref<4x1xf32, #tpu.memory_space<vmem>>, vector<4x1xf32>,
    %cst_25 = arith.constant dense<0.000000e+00> : vector<4x4xf32>
    %61 = tpu.matmul %7, %9, %cst_25 {dimension_numbers = #tpu.dot_dimension_numbers<[1], [1], [0], [0], [0, 0, 1, 0], [], []>} : vector<4x32xf32>, vector<4x32xf32>, vector<4x4xf32> -> vector<4x4xf32>
    %cst_26 = arith.constant 2.000000e+00 : f32
    %62 = vector.broadcast %cst_26 : f32 to vector<4x4xf32>
    %63 = arith.mulf %61, %62 : vector<4x4xf32>
    %cst_27 = arith.constant dense<0.000000e+00> : vector<4x4xf32>
    %64 = tpu.matmul %7, %11, %cst_27 {dimension_numbers = #tpu.dot_dimension_numbers<[1], [1], [0], [0], [0, 0, 1, 0], [], []>} : vector<4x32xf32>, vector<4x32xf32>, vector<4x4xf32> -> vector<4x4xf32>
    %cst_28 = arith.constant 2.000000e+00 : f32
    %65 = vector.broadcast %cst_28 : f32 to vector<4x4xf32>
    %66 = arith.mulf %64, %65 : vector<4x4xf32>
    %67 = arith.addf %66, %25 : vector<4x4xf32>
    %cst_29 = arith.constant dense<0xFF800000> : vector<4xf32>
    %68 = vector.multi_reduction <maximumf>, %63, %cst_29 [1] : vector<4x4xf32> to vector<4xf32>
    %69 = vector.shape_cast %68 : vector<4xf32> to vector<4x1xf32>
    %cst_30 = arith.constant dense<0xFF800000> : vector<4xf32>
    %70 = vector.multi_reduction <maximumf>, %67, %cst_30 [1] : vector<4x4xf32> to vector<4xf32>
    %71 = vector.shape_cast %70 : vector<4xf32> to vector<4x1xf32>
    %72 = arith.maximumf %69, %71 : vector<4x1xf32>
    %c0_31 = arith.constant 0 : index
    %c0_32 = arith.constant 0 : index
    %73 = vector.load %arg8[%c0_31, %c0_32] : memref<4x1xf32, #tpu.memory_space<vmem>>, vector<4x1xf32>
    %74 = arith.maximumf %73, %72 : vector<4x1xf32>
    %c0_33 = arith.constant 0 : index
    %c0_34 = arith.constant 0 : index
    %75 = vector.load %arg8[%c0_33, %c0_34] : memref<4x1xf32, #tpu.memory_space<vmem>>, vector<4x1xf32>
    %76 = arith.subf %75, %74 : vector<4x1xf32>
    %77 = math.exp %76 : vector<4x1xf32>
    %c0_35 = arith.constant 0 : index
    %c0_36 = arith.constant 0 : index
    %78 = vector.load %arg9[%c0_35, %c0_36] : memref<4x1xf32, #tpu.memory_space<vmem>>, vector<4x1xf32>
    %79 = arith.mulf %77, %78 : vector<4x1xf32>
    %80 = vector.broadcast %74 : vector<4x1xf32> to vector<4x4xf32>
    %81 = arith.subf %63, %80 : vector<4x4xf32>
    %82 = math.exp %81 : vector<4x4xf32>
    %cst_37 = arith.constant dense<0.000000e+00> : vector<4xf32>
    %83 = vector.multi_reduction <add>, %82, %cst_37 [1] : vector<4x4xf32> to vector<4xf32>
    %84 = vector.shape_cast %83 : vector<4xf32> to vector<4x1xf32>
    %85 = arith.addf %79, %84 : vector<4x1xf32>
    %86 = vector.broadcast %74 : vector<4x1xf32> to vector<4x4xf32>
    %87 = arith.subf %67, %86 : vector<4x4xf32>
    %88 = math.exp %87 : vector<4x4xf32>
    %cst_38 = arith.constant dense<0.000000e+00> : vector<4xf32>
    %89 = vector.multi_reduction <add>, %88, %cst_38 [1] : vector<4x4xf32> to vector<4xf32>
    %90 = vector.shape_cast %89 : vector<4xf32> to vector<4x1xf32>
    %91 = arith.addf %85, %90 : vector<4x1xf32>
    %c0_39 = arith.constant 0 : index
    %c0_40 = arith.constant 0 : index
    %92 = vector.load %arg9[%c0_39, %c0_40] : memref<4x1xf32, #tpu.memory_space<vmem>>, vector<4x1xf32>
    tpu.vector_store %arg9[%c0_39, %c0_40], %91 {strides = array<i32>} : memref<4x1xf32, #tpu.memory_space<vmem>>, vector<4x1xf32>,
    %c0_41 = arith.constant 0 : index
    %c0_42 = arith.constant 0 : index
    %93 = vector.load %arg8[%c0_41, %c0_42] : memref<4x1xf32, #tpu.memory_space<vmem>>, vector<4x1xf32>
    tpu.vector_store %arg8[%c0_41, %c0_42], %74 {strides = array<i32>} : memref<4x1xf32, #tpu.memory_space<vmem>>, vector<4x1xf32>,
    %c0_i32_43 = arith.constant 0 : i32
    %94 = arith.cmpi eq, %arg1, %c0_i32_43 : i32
    %95 = arith.extui %94 : i1 to i32
    %c0_i32_44 = arith.constant 0 : i32
    %96 = arith.cmpi ne, %95, %c0_i32_44 : i32
    scf.if %96 {
      %c0_45 = arith.constant 0 : index
      %c0_46 = arith.constant 0 : index
      %97 = vector.load %arg6[%c0_45, %c0_46] : memref<4x1xf32, #tpu.memory_space<vmem>>, vector<4x1xf32>
      %c0_47 = arith.constant 0 : index
      %c0_48 = arith.constant 0 : index
      %98 = vector.load %arg7[%c0_47, %c0_48] : memref<4x1xf32, #tpu.memory_space<vmem>>, vector<4x1xf32>
      %99 = math.log %98 : vector<4x1xf32>
      %100 = arith.addf %97, %99 : vector<4x1xf32>
      %c0_49 = arith.constant 0 : index
      %c0_50 = arith.constant 0 : index
      %101 = vector.load %arg10[%c0_49, %c0_50] : memref<4x1xf32, #tpu.memory_space<vmem>>, vector<4x1xf32>
      %102 = arith.subf %100, %101 : vector<4x1xf32>
      %c0_51 = arith.constant 0 : index
      %c0_52 = arith.constant 0 : index
      %103 = vector.load %arg4[%c0_51, %c0_52] : memref<4x1xf32, #tpu.memory_space<vmem>>, vector<4x1xf32>
      tpu.vector_store %arg4[%c0_51, %c0_52], %102 {strides = array<i32>} : memref<4x1xf32, #tpu.memory_space<vmem>>, vector<4x1xf32>,
      %c0_53 = arith.constant 0 : index
      %c0_54 = arith.constant 0 : index
      %104 = vector.load %arg8[%c0_53, %c0_54] : memref<4x1xf32, #tpu.memory_space<vmem>>, vector<4x1xf32>
      %c0_55 = arith.constant 0 : index
      %c0_56 = arith.constant 0 : index
      %105 = vector.load %arg9[%c0_55, %c0_56] : memref<4x1xf32, #tpu.memory_space<vmem>>, vector<4x1xf32>
      %106 = math.log %105 : vector<4x1xf32>
      %107 = arith.addf %104, %106 : vector<4x1xf32>
      %c0_57 = arith.constant 0 : index
      %c0_58 = arith.constant 0 : index
      %108 = vector.load %arg10[%c0_57, %c0_58] : memref<4x1xf32, #tpu.memory_space<vmem>>, vector<4x1xf32>
      %109 = arith.subf %107, %108 : vector<4x1xf32>
      %c0_59 = arith.constant 0 : index
      %c0_60 = arith.constant 0 : index
      %110 = vector.load %arg5[%c0_59, %c0_60] : memref<4x1xf32, #tpu.memory_space<vmem>>, vector<4x1xf32>
      tpu.vector_store %arg5[%c0_59, %c0_60], %109 {strides = array<i32>} : memref<4x1xf32, #tpu.memory_space<vmem>>, vector<4x1xf32>,
    } else {
    }
    return
  }
  func.func @transform_0(%arg0: i32, %arg1: i32) -> (i32, i32) {
    %c0_i32 = arith.constant 0 : i32
    %c0_i32_0 = arith.constant 0 : i32
    %c0_i32_1 = arith.constant 0 : i32
    return %c0_i32, %c0_i32_0 : i32, i32
  }
  func.func @transform_1(%arg0: i32, %arg1: i32) -> (i32, i32) {
    %c0_i32 = arith.constant 0 : i32
    %c0_i32_0 = arith.constant 0 : i32
    %c0_i32_1 = arith.constant 0 : i32
    return %c0_i32, %c0_i32_0 : i32, i32
  }
  func.func @transform_2(%arg0: i32, %arg1: i32) -> (i32, i32) {
    %c0_i32 = arith.constant 0 : i32
    %c0_i32_0 = arith.constant 0 : i32
    return %arg0, %c0_i32 : i32, i32
  }
  func.func @transform_3(%arg0: i32, %arg1: i32) -> (i32, i32) {
    %c0_i32 = arith.constant 0 : i32
    %c0_i32_0 = arith.constant 0 : i32
    return %arg0, %c0_i32 : i32, i32
  }
}

</mosaic_0001>

<bundles_post_ra>
// kernel: tpu_custom_call.1
= control target key start
LH: loop header
LB: loop body
LE: loop exit
PB: predicated region body
PF: predicated region fallthrough
CT: control target
= control target key end

     0   :  { %9 = vsyncpa [#allocation8], 0  ;;  %s692_s0 = inlined_call_operand.hbm [shape: f32[4,32], index: 0, kind: input, shape index: {}]   ;;  %s693_s1 = inlined_call_operand.hbm [shape: f32[4,32], index: 1, kind: input, shape index: {}]   ;;  %s694_s2 = inlined_call_operand.vmem [shape: f32[4,1], index: 2, kind: output, shape index: {0}]   ;;  %s695_s3 = inlined_call_operand.vmem [shape: f32[4,1], index: 3, kind: output, shape index: {1}]  }
   0x1   :  { %10 = vsyncpa [#allocation10], 0  ;;  %s586_s12 = smov [#allocation7]   ;;  %s587_s14 = smov [#allocation9]  }
   0x2   :  { %s17_s13 = sshll.u32 %s586_s12, 4  ;;  %s27_s15 = sshll.u32 %s587_s14, 4  ;;  %s18_s13 = int_to_ptr.vmem [resolvable:$true] %s17_s13  ;;  %s28_s15 = int_to_ptr.vmem [resolvable:$true] %s27_s15 }
   0x3   :  { %s538_s18 = scalar_lea.hbm %s692_s0, 64 }
   0x4   :  { %p539_p0 = scmp.ne.s32.totalorder %s692_s0, %s538_s18  ;;  %p542_p1 = scmp.lt.u32.totalorder %s538_s18, %s692_s0 }
   0x6   :  { %p544_p2 = pnand %p542_p1, %p539_p0 }
   0x8   :  { %547 = shalt.err (!%p544_p2)
}
   0x9   :  { %s548_s23 = scalar_lea.vmem %s18_s13, 64  ;;  %p553_p4 = scmp.lt.s32.totalorder %s18_s13, %s18_s13 }
   0xa   :  { %p549_p3 = scmp.ne.s32.totalorder %s18_s13, %s548_s23  ;;  %p554_p5 = scmp.lt.s32.totalorder %s548_s23, %s548_s23 }
   0xc   :  { %p555_p6 = por %p554_p5, %p553_p4 }
   0xe   :  { %p556_p7 = pnand %p555_p6, %p549_p3 }
  0x10   :  { %559 = shalt.err (!%p556_p7)
}
  0x11   :  { %20 = dma.hbm_to_vmem [thread:$0]  %s692_s0, 64, %s18_s13, [#allocation8]  }
  0x12   :  { %s560_s28 = scalar_lea.hbm %s693_s1, 64 }
  0x13   :  { %p561_p8 = scmp.ne.s32.totalorder %s693_s1, %s560_s28  ;;  %p564_p9 = scmp.lt.u32.totalorder %s560_s28, %s693_s1 }
  0x15   :  { %p566_p10 = pnand %p564_p9, %p561_p8 }
  0x17   :  { %569 = shalt.err (!%p566_p10)
}
  0x18   :  { %s570_s6 = scalar_lea.vmem %s28_s15, 64  ;;  %p575_p12 = scmp.lt.s32.totalorder %s28_s15, %s28_s15 }
  0x19   :  { %p571_p11 = scmp.ne.s32.totalorder %s28_s15, %s570_s6  ;;  %p576_p13 = scmp.lt.s32.totalorder %s570_s6, %s570_s6 }
  0x1b   :  { %p577_p0 = por %p576_p13, %p575_p12 }
  0x1d   :  { %p578_p1 = pnand %p577_p0, %p571_p11 }
  0x1f   :  { %581 = shalt.err (!%p578_p1)
}
  0x20   :  { %30 = dma.hbm_to_vmem [thread:$0]  %s693_s1, 64, %s28_s15, [#allocation10]  }
  0x21   :  { %582 = dma.done.wait [#allocation8], 64  }
  0x22   :  { %583 = vsyncadd [#allocation8], 4294967232 }
  0x23   :  { %584 = dma.done.wait [#allocation10], 64  }
  0x24   :  { %585 = vsyncadd [#allocation10], 4294967232  ;;  %v588_v0 = vmov 0.0   ;;  %vm589_vm0 = vmmov 0   ;;  %vm68_vm1 = vcmask 261120   ;;  %v58_v5 = vlaneseq }
  0x25   :  { %494 = vmatprep.subr.mxu0 %v588_v0  ;;  %499 = vmatprep.subr.mxu1 %v588_v0  ;;  %v44_v1 = vld [vmem:[#allocation7] sm:$0xf]  ;;  %v46_v2 = vld [vmem:[#allocation9] sm:$0xf]  ;;  %vm225_vm3 = vcmask 27648   ;;  %vm51_vm4 = vcmask 3072  }
  0x26   :  { %496 = vmatprep.mubr.msk.f32.mxu0 %vm589_vm0, %v588_v0  ;;  %501 = vmatprep.mubr.msk.f32.mxu1 %vm589_vm0, %v588_v0  ;;  %v40_v3 = vld [vmem:[#allocation7] sm:$0xf]  ;;  %v42_v4 = vld [vmem:[#allocation9] sm:$0xf]  ;;  %v648_v6 = vshrl.u32 %v58_v5, 7  ;;  %v650_v7 = vand.u32 127, %v58_v5 }
  0x27   :  { %495 = vmatpush3.xpose.msk.msra.mxu0 %vm68_vm1, %v44_v1  ;;  %500 = vmatpush3.xpose.msk.msra.mxu1 %vm68_vm1, %v46_v2  ;;  %v590_v27 = vmov -1e+30   ;;  %54 = vst.msk [vmem:[#allocation3] sm:$0xf] %vm51_vm4, %v588_v0  ;;  %55 = vst.msk [vmem:[#allocation5] sm:$0xf] %vm51_vm4, %v588_v0 }
  0x28   :  { %504 = vmatprep.subr.mxu0 %v588_v0  ;;  %509 = vmatprep.subr.mxu1 %v588_v0  ;;  %vm62_vm2 = vcmp.eq.s32.totalorder %v648_v6, %v650_v7  ;;  %52 = vst.msk [vmem:[#allocation2] sm:$0xf] %vm51_vm4, %v590_v27  ;;  %53 = vst.msk [vmem:[#allocation4] sm:$0xf] %vm51_vm4, %v590_v27  ;;  %v591_v28 = vmov 0  }
  0x29   :  { %v63_v10 = vsel %vm62_vm2, -1e+30, %v588_v0  ;;  %56 = vst.msk [vmem:[#allocation6] sm:$0xf] %vm51_vm4, %v588_v0  ;;  %520 = vset.pattern.permute.xlu0 %v591_v28  ;;  %521 = vset.pattern.permute.xlu1 %v591_v28 }
  0x2a   :  { %497 = vmatmul.mubr.msk.f32.vlgmr.msra.gmra.mrb[0].mxu0 %vm68_vm1, %v40_v3  ;;  %502 = vmatmul.mubr.msk.f32.vlgmr.msra.gmra.mrb[0].mxu1 %vm68_vm1, %v40_v3 }
  0x2b   :  { %505 = vmatpush3.xpose.msk.msra.mxu0 %vm68_vm1, %v44_v1  ;;  %506 = vmatprep.mubr.msk.f32.mxu0 %vm589_vm0, %v588_v0 }
  0x2c   :  { %510 = vmatpush3.xpose.msk.msra.mxu1 %vm68_vm1, %v46_v2  ;;  %511 = vmatprep.mubr.msk.f32.mxu1 %vm589_vm0, %v588_v0 }
  0x2e   :  { %507 = vmatmul.mubr.msk.f32.vlgmr.msra.gmra.mrb[2].mxu0 %vm68_vm1, %v42_v4  ;;  %v244_v0 = vld [vmem:[#allocation3] sm:$0xf] }
  0x2f   :  { %512 = vmatmul.mubr.msk.f32.vlgmr.msra.gmra.mrb[2].mxu1 %vm68_vm1, %v42_v4  ;;  %v239_v31 = vld [vmem:[#allocation2] sm:$0xf]  ;;  %v421_v34 = vld [vmem:[#allocation4] sm:$0xf]  ;;  %v426_v4 = vld [vmem:[#allocation5] sm:$0xf] }
  0xfd   :  { %v141_v8 = vpop.f32.mrb[0].mxu0  ;;  %v216_v9 = vpop.f32.mrb[0].mxu1 }
  0xfe   :  { %v145_v11 = vmul.f32 2.0, %v141_v8  ;;  %v498_v12 = vpop.f32.mrb[1].mxu0  ;;  %v503_v13 = vpop.f32.mrb[1].mxu1  ;;  %v657_v14 = vmul.f32 2.0, %v216_v9 }
 0x100   :  { %v146_v15 = vadd.f32 %v145_v11, %v63_v10  ;;  %v235_v24 = vsel %vm225_vm3, %v657_v14, -inf  ;;  %v224_v59 = vsel %vm62_vm2, %v657_v14, 0.0 }
 0x101   :  { %v337_v16 = vpop.f32.mrb[2].mxu0  ;;  %v226_v60 = vsel %vm225_vm3, %v224_v59, 0.0 }
 0x102   :  { %v341_v17 = vmul.f32 2.0, %v337_v16  ;;  %v408_v18 = vpop.f32.mrb[2].mxu1  ;;  %v232_v19 = vsel %vm225_vm3, %v146_v15, -inf  ;;  %v508_v20 = vpop.f32.mrb[3].mxu0 }
 0x103   :  { %v412_v21 = vmul.f32 2.0, %v408_v18  ;;  %233 = vmax.xlane.f32.xlu0 %v232_v19  ;;  %v513_v22 = vpop.f32.mrb[3].mxu1 }
 0x104   :  { %v414_v23 = vsel %vm225_vm3, %v341_v17, -inf }
 0x105   :  { %415 = vmax.xlane.f32.xlu1 %v414_v23  ;;  %v413_v25 = vadd.f32 %v412_v21, %v63_v10 }
 0x107   :  { %236 = vmax.xlane.f32.xlu0 %v235_v24  ;;  %v417_v26 = vsel %vm225_vm3, %v413_v25, -inf }
 0x109   :  { %418 = vmax.xlane.f32.xlu1 %v417_v26 }
 0x190   :  { %v234_v29 = vpop.xlane.xlu0 %233 }
 0x192   :  { %v416_v30 = vpop.xlane.xlu1 %415 }
 0x194   :  { %v237_v32 = vpop.xlane.xlu0 %236 }
 0x195   :  { %v238_v33 = vmax.f32 %v234_v29, %v237_v32 }
 0x196   :  { %v419_v35 = vpop.xlane.xlu1 %418 }
 0x197   :  { %v240_v36 = vmax.f32 %v239_v31, %v238_v33  ;;  %v420_v37 = vmax.f32 %v416_v30, %v419_v35 }
 0x199   :  { %v241_v38 = vsub.f32 %v239_v31, %v240_v36  ;;  %267 = vst.msk [vmem:[#allocation2] sm:$0xf] %vm51_vm4, %v240_v36  ;;  %v422_v39 = vmax.f32 %v421_v34, %v420_v37  ;;  %248 = vperm.xlu0 %520, %v240_v36  }
 0x19b   :  { %v423_v40 = vsub.f32 %v421_v34, %v422_v39  ;;  %448 = vst.msk [vmem:[#allocation4] sm:$0xf] %vm51_vm4, %v422_v39  ;;  %430 = vperm.xlu1 %521, %v422_v39   ;;  %v242_v61 = vmul.f32 1.442695, %v241_v38 }
 0x19d   :  { %v424_v62 = vmul.f32 1.442695, %v423_v40 }
 0x1a0   :  { %v452_v18 = vld [vmem:[#allocation2] sm:$0xf] }
 0x1a2   :  { %v460_v24 = vld [vmem:[#allocation4] sm:$0xf] }
 0x218   :  { %v249_v41 = vpop.permute.xlu0 %248 }
 0x219   :  { %v251_v42 = vsub.f32 %v146_v15, %v249_v41  ;;  %v258_v43 = vsub.f32 %v657_v14, %v249_v41 }
 0x21a   :  { %v431_v44 = vpop.permute.xlu1 %430 }
 0x21b   :  { %v252_v45 = vmul.f32 1.442695, %v251_v42  ;;  %v259_v46 = vmul.f32 1.442695, %v258_v43  ;;  %v433_v47 = vsub.f32 %v341_v17, %v431_v44  ;;  %v440_v48 = vsub.f32 %v413_v25, %v431_v44 }
 0x21d   :  { %522 = vpow2.f32 %v252_v45  ;;  %v434_v49 = vmul.f32 1.442695, %v433_v47  ;;  %v441_v50 = vmul.f32 1.442695, %v440_v48 }
 0x21e   :  { %524 = vpow2.f32 %v259_v46 }
 0x21f   :  { %526 = vpow2.f32 %v434_v49 }
 0x220   :  { %528 = vpow2.f32 %v441_v50 }
 0x221   :  { %530 = vpow2.f32 %v242_v61 }
 0x222   :  { %532 = vpow2.f32 %v424_v62 }
 0x227   :  { %v523_v51 = vpop.eup %522 }
 0x228   :  { %v525_v52 = vpop.eup %524  ;;  %v254_v53 = vsel %vm225_vm3, %v523_v51, 0.0 }
 0x229   :  { %v527_v54 = vpop.eup %526  ;;  %255 = vadd.xlane.f32.xlu1 %v254_v53  ;;  %v261_v56 = vsel %vm225_vm3, %v525_v52, 0.0 }
 0x22a   :  { %v436_v55 = vsel %vm225_vm3, %v527_v54, 0.0  ;;  %v529_v57 = vpop.eup %528 }
 0x22b   :  { %437 = vadd.xlane.f32.xlu0 %v436_v55  ;;  %v443_v58 = vsel %vm225_vm3, %v529_v57, 0.0  ;;  %v531_v63 = vpop.eup %530 }
 0x22c   :  { %v245_v2 = vmul.f32 %v531_v63, %v244_v0  ;;  %v533_v3 = vpop.eup %532 }
 0x22d   :  { %262 = vadd.xlane.f32.xlu1 %v261_v56  ;;  %v427_v10 = vmul.f32 %v533_v3, %v426_v4 }
 0x231   :  { %444 = vadd.xlane.f32.xlu1 %v443_v58 }
 0x235   :  { %227 = vadd.xlane.f32.xlu1 %v226_v60 }
 0x2b6   :  { %v256_v1 = vpop.xlane.xlu1 %255 }
 0x2b7   :  { %v257_v5 = vadd.f32 %v256_v1, %v245_v2 }
 0x2b8   :  { %v438_v8 = vpop.xlane.xlu0 %437 }
 0x2b9   :  { %v439_v6 = vadd.f32 %v438_v8, %v427_v10 }
 0x2ba   :  { %v263_v9 = vpop.xlane.xlu1 %262 }
 0x2bb   :  { %v264_v11 = vadd.f32 %v263_v9, %v257_v5 }
 0x2bd   :  { %266 = vst.msk [vmem:[#allocation3] sm:$0xf] %vm51_vm4, %v264_v11 }
 0x2be   :  { %v445_v7 = vpop.xlane.xlu1 %444 }
 0x2bf   :  { %v446_v12 = vadd.f32 %v445_v7, %v439_v6 }
 0x2c1   :  { %447 = vst.msk [vmem:[#allocation5] sm:$0xf] %vm51_vm4, %v446_v12 }
 0x2c2   :  { %v228_v13 = vpop.xlane.xlu1 %227 }
 0x2c3   :  { %230 = vst.msk [vmem:[#allocation6] sm:$0xf] %vm51_vm4, %v228_v13 }
 0x2c4   :  { %v453_v14 = vld [vmem:[#allocation3] sm:$0xf] }
 0x2c5   :  { %534 = vlog2.f32 %v453_v14 }
 0x2c8   :  { %v461_v15 = vld [vmem:[#allocation5] sm:$0xf] }
 0x2c9   :  { %536 = vlog2.f32 %v461_v15 }
 0x2ca   :  { %v457_v21 = vld [vmem:[#allocation6] sm:$0xf] }
 0x2cb   :  { %v465_v26 = vld [vmem:[#allocation6] sm:$0xf] }
 0x2cf   :  { %v535_v16 = vpop.eup %534 }
 0x2d0   :  { %v455_v17 = vmul.f32 0.6931472, %v535_v16 }
 0x2d2   :  { %v456_v19 = vadd.f32 %v455_v17, %v452_v18 }
 0x2d3   :  { %v537_v20 = vpop.eup %536 }
 0x2d4   :  { %v458_v22 = vsub.f32 %v456_v19, %v457_v21  ;;  %v463_v23 = vmul.f32 0.6931472, %v537_v20 }
 0x2d6   :  { %459 = vst.msk [vmem:[%s694_s2] sm:$0xf] %vm51_vm4, %v458_v22  ;;  %v464_v25 = vadd.f32 %v463_v23, %v460_v24 }
 0x2d8   :  { %v466_v27 = vsub.f32 %v464_v25, %v465_v26 }
 0x2da   :  { %467 = vst.msk [vmem:[%s695_s3] sm:$0xf] %vm51_vm4, %v466_v27 }
 0x2db   :  { %476 = vsyncpa [#allocation8], 1 }
 0x2dc   :  { %477 = vsyncpa [#allocation10], 1 }

</bundles_post_ra>
